<compile_context>
chip_gen: v6e
topology: v6e:2x2x1
jax: 0.10.0
libtpu: 0.0.40
codegen_flags: <defaults>
</compile_context>

<pallas_src>
import jax
import jax.numpy as jnp
from jax.experimental import pallas as pl
from jax.experimental.pallas import tpu as pltpu

_LANE = 128
_MAX_BLOCK_BYTES = 4 * 1024 * 1024  # per in/out block; x4 double-buffered in+out


def _round_up(x: int, m: int) -> int:
    return ((x + m - 1) // m) * m


# ------------------------- Pallas kernel ------------------------- #

def _gain_kernel(scale_ref, x_ref, o_ref):
    # scale_ref: (B,) float32 per-example linear gain, scalar-prefetched (SMEM)
    # x_ref / o_ref: (1, rows_tile, 128) audio tile in VMEM
    b = pl.program_id(0)
    scale = scale_ref[b]                                   # scalar SMEM read
    o_ref[...] = (x_ref[...] * scale).astype(o_ref.dtype)  # single VPU multiply


def gain_pallas(audio: jax.Array, scale: jax.Array) -> jax.Array:
    """Apply per-example linear gain `scale` [B] to audio of shape [B, T]."""
    B, T = audio.shape
    scale = scale.reshape(B).astype(jnp.float32)
    itemsize = jnp.dtype(audio.dtype).itemsize

    R = T // _LANE                 # number of full 128-lane rows
    tail = T - R * _LANE           # <=127 leftover samples per example

    if R == 0:
        # Input shorter than one lane row: not worth a kernel launch.
        return (audio.astype(jnp.float32) * scale[:, None]).astype(audio.dtype)

    # 128-aligned prefix as a lane/sublane-dense 3-D view (free bitcast when
    # T is already a multiple of 128, a single cheap slice otherwise).
    prefix = audio if tail == 0 else audio[:, : R * _LANE]
    x3 = prefix.reshape(B, R, _LANE)

    # Dtype-aware sublane packing: 8 rows for f32, 16 for bf16/f16, 32 for int8.
    sub = 8 * (4 // itemsize)

    # Largest rows-per-block under the per-block byte cap (multiple of `sub`).
    max_rows = max(sub, (_MAX_BLOCK_BYTES // (_LANE * itemsize)) // sub * sub)

    # Number of time chunks: respect the VMEM cap; when the batch alone cannot
    # feed both v7x TensorCores (B == 1), split the time axis too.
    n_chunks = pl.cdiv(R, max_rows)
    if B * n_chunks < 2 and R >= 2 * sub:
        n_chunks = max(n_chunks, 2)

    if n_chunks > 1:
        # Balanced, near-equal chunks rounded to the sublane multiple (avoids a
        # tiny, mostly-masked trailing block).
        rows_tile = _round_up(pl.cdiv(R, n_chunks), sub)
    else:
        rows_tile = R  # full-extent block: always a legal block shape

    grid = (B, pl.cdiv(R, rows_tile))

    # Right-sized VMEM ask: double-buffered (in + out) blocks plus slack.
    block_bytes = rows_tile * _LANE * itemsize
    vmem_limit = min(48 * 1024 * 1024, 4 * block_bytes + 8 * 1024 * 1024)

    out3 = pl.pallas_call(
        _gain_kernel,
        out_shape=jax.ShapeDtypeStruct((B, R, _LANE), audio.dtype),
        grid_spec=pltpu.PrefetchScalarGridSpec(
            num_scalar_prefetch=1,         # per-example scale lands in SMEM
            grid=grid,
            in_specs=[
                pl.BlockSpec((1, rows_tile, _LANE),
                             lambda b, t, scale_ref: (b, t, 0)),
            ],
            out_specs=pl.BlockSpec((1, rows_tile, _LANE),
                                   lambda b, t, scale_ref: (b, t, 0)),
        ),
        compiler_params=pltpu.CompilerParams(
            dimension_semantics=("parallel", "parallel"),
            vmem_limit_bytes=vmem_limit,
        ),
        cost_estimate=pl.CostEstimate(
            flops=B * R * _LANE,
            transcendentals=0,
            bytes_accessed=2 * B * R * _LANE * itemsize,
        ),
    )(scale, x3)

    out_prefix = out3.reshape(B, R * _LANE)
    if tail == 0:
        return out_prefix

    # Tiny tail (<128 samples/example): fused XLA multiply, then one concat.
    tail_out = (audio[:, R * _LANE:].astype(jnp.float32)
                * scale[:, None]).astype(audio.dtype)
    return jnp.concatenate([out_prefix, tail_out], axis=1)


# --------------------- Module-level wrapper ----------------------- #

class GainPallas:
    """JAX/Pallas equivalent of the PyTorch `Gain` module."""

    def __init__(self, min_gain_in_db: float = -18.0, max_gain_in_db: float = 6.0,
                 p: float = 0.5):
        self.min_gain_in_db = min_gain_in_db
        self.max_gain_in_db = max_gain_in_db
        self.p = p

    def __call__(self, audio: jax.Array, key: jax.Array) -> jax.Array:
        # audio: [batch, time]. Random parameter sampling is plain JAX glue
        # (tiny B-length ops); the elementwise gain (the hot path) runs in
        # the Pallas kernel.
        B = audio.shape[0]
        k_gain, k_apply = jax.random.split(key)
        gain_db = jax.random.uniform(
            k_gain, (B,), minval=self.min_gain_in_db, maxval=self.max_gain_in_db,
            dtype=jnp.float32)
        apply_mask = jax.random.bernoulli(k_apply, p=self.p, shape=(B,))
        # Examples not selected get 0 dB (unchanged), matching per-example p.
        gain_db = jnp.where(apply_mask, gain_db, 0.0)
        # dB -> linear scale computed once (B-length), consumed from SMEM.
        scale = jnp.power(10.0, gain_db / 20.0).astype(jnp.float32)

        # unsqueeze(dim=1) -> gain -> squeeze(dim=1) is equivalent to operating
        # directly on [batch, time].
        return gain_pallas(audio, scale)


# ------------------------------ main ------------------------------ #

if __name__ == "__main__":
    key = jax.random.PRNGKey(0)
    k_data, k_aug = jax.random.split(key)

    # Genuinely ragged T (16001 % 128 != 0) exercises the aligned-prefix +
    # XLA-tail path; small, module-consistent shape.
    B, T = 2, 16001
    audio = jax.random.normal(k_data, (B, T), dtype=jnp.float32)

    gain = GainPallas(min_gain_in_db=-18.0, max_gain_in_db=6.0, p=0.5)
    out = jax.block_until_ready(gain(audio, k_aug))
    assert out.shape == audio.shape and out.dtype == audio.dtype

    # Cross-check against a pure-JAX reference with the same sampled gains.
    k_gain, k_apply = jax.random.split(k_aug)
    gain_db = jax.random.uniform(k_gain, (B,), minval=-18.0, maxval=6.0,
                                 dtype=jnp.float32)
    apply_mask = jax.random.bernoulli(k_apply, p=0.5, shape=(B,))
    gain_db = jnp.where(apply_mask, gain_db, 0.0)
    ref = audio * (10.0 ** (gain_db / 20.0))[:, None]
    assert jnp.allclose(out, ref, rtol=1e-5, atol=1e-5)

    # Aligned-T bf16 path: exercises dtype-aware sublane rounding (16-row
    # multiple) and the B=1 -> >=2 grid-iteration split for v7x's two TCs.
    audio_bf = jax.random.normal(k_data, (1, 4096), dtype=jnp.bfloat16)
    scale_bf = jnp.array([0.5], dtype=jnp.float32)
    out_bf = jax.block_until_ready(gain_pallas(audio_bf, scale_bf))
    ref_bf = (audio_bf.astype(jnp.float32) * 0.5).astype(jnp.bfloat16)
    assert out_bf.dtype == jnp.bfloat16
    assert jnp.allclose(out_bf.astype(jnp.float32), ref_bf.astype(jnp.float32),
                        rtol=1e-2, atol=1e-2)

    print("KERNEL_OK")
</pallas_src>

<mosaic_0001>
module attributes {stable_mosaic.version = 11 : i64} {
  func.func @_gain_kernel(%arg0: i32, %arg1: i32, %arg2: memref<2xf32, #tpu.memory_space<smem>>, %arg3: memref<1x125x128xf32, #tpu.memory_space<vmem>>, %arg4: memref<1x125x128xf32, #tpu.memory_space<vmem>>) attributes {dimension_semantics = [#tpu.dimension_semantics<parallel>, #tpu.dimension_semantics<parallel>], iteration_bounds = array<i64: 2, 1>, scalar_prefetch = 1 : i64, scratch_operands = 0 : i64, tpu.core_type = #tpu.core_type<tc>, window_params = [{transform_indices = @transform_0, window_bounds = array<i64: 1, 125, 128>}, {transform_indices = @transform_1, window_bounds = array<i64: 1, 125, 128>}]} {
    %0 = arith.index_cast %arg0 : i32 to index
    %1 = memref.load %arg2[%0] : memref<2xf32, #tpu.memory_space<smem>>
    %c0 = arith.constant 0 : index
    %c0_0 = arith.constant 0 : index
    %c0_1 = arith.constant 0 : index
    %2 = vector.load %arg3[%c0, %c0_0, %c0_1] : memref<1x125x128xf32, #tpu.memory_space<vmem>>, vector<1x125x128xf32>
    %3 = vector.broadcast %1 : f32 to vector<1x125x128xf32>
    %4 = arith.mulf %2, %3 : vector<1x125x128xf32>
    %c0_2 = arith.constant 0 : index
    %c0_3 = arith.constant 0 : index
    %c0_4 = arith.constant 0 : index
    %5 = vector.load %arg4[%c0_2, %c0_3, %c0_4] : memref<1x125x128xf32, #tpu.memory_space<vmem>>, vector<1x125x128xf32>
    tpu.vector_store %arg4[%c0_2, %c0_3, %c0_4], %4 {strides = array<i32>} : memref<1x125x128xf32, #tpu.memory_space<vmem>>, vector<1x125x128xf32>,
    return
  }
  func.func @transform_0(%arg0: i32, %arg1: i32, %arg2: memref<2xf32, #tpu.memory_space<smem>>) -> (i32, i32, i32) {
    %c0_i32 = arith.constant 0 : i32
    %c0_i32_0 = arith.constant 0 : i32
    return %arg0, %arg1, %c0_i32 : i32, i32, i32
  }
  func.func @transform_1(%arg0: i32, %arg1: i32, %arg2: memref<2xf32, #tpu.memory_space<smem>>) -> (i32, i32, i32) {
    %c0_i32 = arith.constant 0 : i32
    %c0_i32_0 = arith.constant 0 : i32
    return %arg0, %arg1, %c0_i32 : i32, i32, i32
  }
}

</mosaic_0001>

<bundles_post_ra>
// kernel: tpu_custom_call.1
= control target key start
LH: loop header
LB: loop body
LE: loop exit
PB: predicated region body
PF: predicated region fallthrough
CT: control target
= control target key end

     0   :  { %s464_s0 = inlined_call_operand.vmem [shape: f32[2], index: 0, kind: input, shape index: {}]   ;;  %s465_s1 = inlined_call_operand.vmem [shape: f32[2,125,128], index: 1, kind: input, shape index: {}]   ;;  %s466_s2 = inlined_call_operand.vmem [shape: f32[2,125,128], index: 2, kind: output, shape index: {}]  }
   0x1   :  { %s7_s11 = sshll.u32 %s464_s0, 4  ;;  %s8_s11 = int_to_ptr.vmem [resolvable:$true] %s7_s11 }
   0x2   :  { %s338_s12 = scalar_lea.vmem %s8_s11, 16  ;;  %p343_p1 = scmp.lt.s32.totalorder %s8_s11, %s8_s11 }
   0x3   :  { %p339_p0 = scmp.ne.s32.totalorder %s8_s11, %s338_s12  ;;  %p344_p2 = scmp.lt.s32.totalorder %s338_s12, %s338_s12 }
   0x5   :  { %p345_p3 = por %p344_p2, %p343_p1 }
   0x7   :  { %p346_p4 = pnand %p345_p3, %p339_p0 }
   0x9   :  { %349 = shalt.err (!%p346_p4)  }
   0xa   :  { %s376_s13 = smov [#allocation3]  }
   0xb   :  { %10 = dma.vmem_to_smem %s8_s11, 16, %s376_s13, [#allocation2] }
   0xc   :  { %362 = dma.done.wait [#allocation2], 16 }
   0xd   :  { %363 = vsyncadd [#allocation2], 4294967280 }
   0xe   :  { %12 = sfence }
   0xf   :  { %s395_s14 = smov 0   ;;  %s397_s15 = smov 0  }
  0x10   :  { %s399_s16 = smov 0  }
  0x11 LB: > { %s30_s0 = sadd.s32 1, %s370_s15  ;;  %p304_p5 = scmp.ge.s32.totalorder %s374_s16, 1  ;;  %s374_s16 = sphi %s399_s16, %s18_s16   ;;  %s370_s15 = sphi %s397_s15, %s468_s15   ;;  %s366_s14 = sphi %s395_s14, %s467_s14  }
  0x12   : > { %p32_p6 = scmp.ge.s32.totalorder %s30_s0, 2  ;;  %p115_p7 = scmp.lt.s32.totalorder %s374_s16, 3 }
  0x14   : > { %s470_s0 = smov (%p32_p6, %s30_s0), 0  ;;  %p116_p8 = pnand %p304_p5, %p115_p7 }
  0x15   : > { %p144_p9 = scmp.lt.s32.totalorder (!%p116_p8), %s366_s14, 1  ;;  %s163_s17 = sld [smem:[#allocation3 + %s366_s14]] (!%p116_p8) }
  0x16   : > { %119 = sbr.rel (%p116_p8) target bundleno = 41 (0x29), region = 24 }
  0x1b   : > { %s472_s14 = smov (!%p144_p9, %s366_s14), 1  ;;  %v180_v1 = vstv %s163_s17 }
  0x1c   : > { %s311_s18 = sshll.u32 %s472_s14, 7 }
  0x1d   : > { %s416_s21 = scalar_lea.vmem %s465_s1, %s311_s18  ;;  %s421_s24 = scalar_lea.vmem %s466_s2, %s311_s18 }
  0x1e   : > { %v164_v0 = vld [vmem:[%s416_s21] sm:$0xff]  ;;  %v165_v2 = vld [vmem:[%s416_s21 + $0x8] sm:$0xff]  ;;  %v166_v3 = vld [vmem:[%s416_s21 + $0x10] sm:$0xff] }
  0x1f   : > { %v181_v4 = vmul.f32 %v180_v1, %v164_v0  ;;  %v182_v5 = vmul.f32 %v180_v1, %v165_v2  ;;  %v183_v6 = vmul.f32 %v180_v1, %v166_v3  ;;  %v167_v7 = vld [vmem:[%s416_s21 + $0x18] sm:$0xff]  ;;  %v168_v8 = vld [vmem:[%s416_s21 + $0x20] sm:$0xff]  ;;  %v169_v9 = vld [vmem:[%s416_s21 + $0x28] sm:$0xff] }
  0x20   : > { %v184_v10 = vmul.f32 %v180_v1, %v167_v7  ;;  %v185_v11 = vmul.f32 %v180_v1, %v168_v8  ;;  %v186_v12 = vmul.f32 %v180_v1, %v169_v9  ;;  %v170_v13 = vld [vmem:[%s416_s21 + $0x30] sm:$0xff]  ;;  %v171_v14 = vld [vmem:[%s416_s21 + $0x38] sm:$0xff]  ;;  %v172_v15 = vld [vmem:[%s416_s21 + $0x40] sm:$0xff] }
  0x21   : > { %197 = vst [vmem:[%s421_s24] sm:$0xff] %v181_v4  ;;  %198 = vst [vmem:[%s421_s24 + $0x8] sm:$0xff] %v182_v5  ;;  %v187_v16 = vmul.f32 %v180_v1, %v170_v13  ;;  %v188_v17 = vmul.f32 %v180_v1, %v171_v14  ;;  %v189_v18 = vmul.f32 %v180_v1, %v172_v15  ;;  %v173_v19 = vld [vmem:[%s416_s21 + $0x48] sm:$0xff]  ;;  %v174_v20 = vld [vmem:[%s416_s21 + $0x50] sm:$0xff] }
  0x22   : > { %199 = vst [vmem:[%s421_s24 + $0x10] sm:$0xff] %v183_v6  ;;  %v175_v21 = vld [vmem:[%s416_s21 + $0x58] sm:$0xff]  ;;  %200 = vst [vmem:[%s421_s24 + $0x18] sm:$0xff] %v184_v10  ;;  %v190_v22 = vmul.f32 %v180_v1, %v173_v19  ;;  %v191_v23 = vmul.f32 %v180_v1, %v174_v20  ;;  %v176_v25 = vld [vmem:[%s416_s21 + $0x60] sm:$0xff] }
  0x23   : > { %201 = vst [vmem:[%s421_s24 + $0x20] sm:$0xff] %v185_v11  ;;  %202 = vst [vmem:[%s421_s24 + $0x28] sm:$0xff] %v186_v12  ;;  %v192_v24 = vmul.f32 %v180_v1, %v175_v21  ;;  %v177_v26 = vld [vmem:[%s416_s21 + $0x68] sm:$0xff]  ;;  %v178_v27 = vld [vmem:[%s416_s21 + $0x70] sm:$0xff]  ;;  %v193_v28 = vmul.f32 %v180_v1, %v176_v25 }
  0x24   : > { %203 = vst [vmem:[%s421_s24 + $0x30] sm:$0xff] %v187_v16  ;;  %204 = vst [vmem:[%s421_s24 + $0x38] sm:$0xff] %v188_v17  ;;  %v194_v29 = vmul.f32 %v180_v1, %v177_v26  ;;  %v195_v30 = vmul.f32 %v180_v1, %v178_v27  ;;  %v179_v31 = vld [vmem:[%s416_s21 + $0x78] sm:$0x1f] }
  0x25   : > { %205 = vst [vmem:[%s421_s24 + $0x40] sm:$0xff] %v189_v18  ;;  %206 = vst [vmem:[%s421_s24 + $0x48] sm:$0xff] %v190_v22  ;;  %v196_v32 = vmul.f32 %v180_v1, %v179_v31 }
  0x26   : > { %207 = vst [vmem:[%s421_s24 + $0x50] sm:$0xff] %v191_v23  ;;  %208 = vst [vmem:[%s421_s24 + $0x58] sm:$0xff] %v192_v24 }
  0x27   : > { %209 = vst [vmem:[%s421_s24 + $0x60] sm:$0xff] %v193_v28  ;;  %210 = vst [vmem:[%s421_s24 + $0x68] sm:$0xff] %v194_v29 }
  0x28   : > { %211 = vst [vmem:[%s421_s24 + $0x70] sm:$0xff] %v195_v30  ;;  %212 = vst [vmem:[%s421_s24 + $0x78] sm:$0x1f] %v196_v32 }
  0x29 PF: > { %s18_s16 = sadd.s32 1, %s374_s16   ;;  %s467_s14 = smov %s370_s15 }
  0x2a   : > { %p15_p10 = scmp.ge.s32.totalorder %s18_s16, 4   ;;  %s468_s15 = smov %s470_s0 }
  0x2c   :  { %17 = sbr.rel (!%p15_p10) target bundleno = 17 (0x11), region = 54 }

</bundles_post_ra>
